<compile_context>
chip_gen: v7x
topology: tpu7x:2x2x1
jax: 0.10.0
libtpu: 0.0.40
codegen_flags: <defaults>
</compile_context>

<pallas_src>
import numpy as np

import jax
import jax.numpy as jnp
from jax.experimental import pallas as pl
from jax.experimental.pallas import tpu as pltpu

IN_FEATURES = 32
HIDDEN = 784
HIDDEN_PAD = 896          # 7 * 128, lane-multiple padding of the hidden dim
OUT_FEATURES = 10
OUT_PAD = 128             # lane-dense output columns for the unfused path

# Batch tiles are tuned for HBM/per-grid-step-overhead amortization, NOT MXU width
# (the folded matmul has K=32, N=10 -- MXU shape is irrelevant there).
MAX_BATCH_TILE_FOLDED = 2048
MAX_BATCH_TILE_LAYERS = 512


# -----------------------------------------------------------------------------
# Helpers
# -----------------------------------------------------------------------------
def _round_up(v, m):
    return (v + m - 1) // m * m


def _pick_batch_tile(B, max_tile):
    """Pick a batch tile: big enough to amortize the ~0.35us/grid-step overhead,
    but >=2 grid blocks when B is large so v7x's two TensorCores both get work
    ('parallel' shards the grid across cores).  Tiles are multiples of 8 (sublane)."""
    if B <= 16:
        return B                                   # one tiny block; splitting is pure overhead
    tb = min(max_tile, _round_up(pl.cdiv(B, 2), 8))
    return min(tb, B)


# -----------------------------------------------------------------------------
# Parameter init / one-time precompute
# -----------------------------------------------------------------------------
def init_params(key, in_features=IN_FEATURES, hidden=HIDDEN, out_features=OUT_FEATURES):
    """PyTorch-Linear-style init (uniform +/- 1/sqrt(fan_in)).
    Weights stored transposed to (in, out); biases as (1, out)."""
    ks = jax.random.split(key, 8)

    def linear(kw, kb, fan_in, fan_out):
        bound = 1.0 / jnp.sqrt(float(fan_in))
        w = jax.random.uniform(kw, (fan_in, fan_out), jnp.float32, -bound, bound)
        b = jax.random.uniform(kb, (1, fan_out), jnp.float32, -bound, bound)
        return w, b

    w1, b1 = linear(ks[0], ks[1], in_features, hidden)
    w2, b2 = linear(ks[2], ks[3], hidden, hidden)
    w3, b3 = linear(ks[4], ks[5], hidden, hidden)
    w4, b4 = linear(ks[6], ks[7], hidden, out_features)
    return dict(w1=w1, b1=b1, w2=w2, b2=b2, w3=w3, b3=b3, w4=w4, b4=b4)


def fold_params(params):
    """One-time algebraic fold of the 4 activation-free linears into a single affine map
    y = x @ W_eff + b_eff.  Done on host in float64 (the 784-wide contractions accumulate
    f32 rounding otherwise), then cast to f32.  Valid ONLY because there are no activations."""
    w = [np.asarray(params[k]).astype(np.float64) for k in ("w1", "w2", "w3", "w4")]
    b = [np.asarray(params[k]).astype(np.float64) for k in ("b1", "b2", "b3", "b4")]
    w_eff = ((w[0] @ w[1]) @ w[2]) @ w[3]                                  # (32, 10)
    b_eff = ((b[0] @ w[1] + b[1]) @ w[2] + b[2]) @ w[3] + b[3]             # (1, 10)
    return {"w": jnp.asarray(w_eff, dtype=jnp.float32),
            "b": jnp.asarray(b_eff, dtype=jnp.float32)}


@jax.jit
def prepare_layer_params(params):
    """One-time prep for the unfused path:
      * zero-pad hidden 784->896 (lane multiple) and output 10->128 (lane-dense store);
        zero padding keeps the math exact (padded rows/cols contribute nothing and the
        padded output columns are sliced off in the wrapper),
      * w2/w3/w4 -> bf16 (halves HBM bytes, fast MXU path); w1 stays f32 (K=32, free accuracy),
      * biases stay f32 (f32 epilogue; v5e has no bf16 VPU path)."""
    def pad(a, shape):
        out = jnp.zeros(shape, a.dtype)
        return out.at[: a.shape[0], : a.shape[1]].set(a)

    return dict(
        w1=pad(params["w1"], (IN_FEATURES, HIDDEN_PAD)),                      # f32
        b1=pad(params["b1"], (1, HIDDEN_PAD)),                                # f32
        w2=pad(params["w2"], (HIDDEN_PAD, HIDDEN_PAD)).astype(jnp.bfloat16),
        b2=pad(params["b2"], (1, HIDDEN_PAD)),
        w3=pad(params["w3"], (HIDDEN_PAD, HIDDEN_PAD)).astype(jnp.bfloat16),
        b3=pad(params["b3"], (1, HIDDEN_PAD)),
        w4=pad(params["w4"], (HIDDEN_PAD, OUT_PAD)).astype(jnp.bfloat16),
        b4=pad(params["b4"], (1, OUT_PAD)),
    )


# -----------------------------------------------------------------------------
# Primary (folded) kernel: one small affine map per call
# -----------------------------------------------------------------------------
def _affine_kernel(x_ref, w_ref, b_ref, o_ref):
    # [tb, 32] @ [32, 10] + [1, 10]
    o_ref[...] = (
        jnp.dot(x_ref[...], w_ref[...], preferred_element_type=jnp.float32)
        + b_ref[...]
    ).astype(o_ref.dtype)


@jax.jit
def mymodel_forward(x, w_eff, b_eff):
    """Forward pass using the pre-folded affine map.  x: [B, 32] f32 -> [B, 10] f32.
    (For such a trivial affine map, plain XLA `x @ w + b` is also fine; the Pallas call
    is kept as the requested custom-kernel path.)"""
    B = x.shape[0]
    tb = _pick_batch_tile(B, MAX_BATCH_TILE_FOLDED)
    nb = pl.cdiv(B, tb)

    return pl.pallas_call(
        _affine_kernel,
        out_shape=jax.ShapeDtypeStruct((B, OUT_FEATURES), x.dtype),
        grid=(nb,),
        in_specs=[
            pl.BlockSpec((tb, IN_FEATURES), lambda i: (i, 0)),
            pl.BlockSpec((IN_FEATURES, OUT_FEATURES), lambda i: (0, 0)),
            pl.BlockSpec((1, OUT_FEATURES), lambda i: (0, 0)),
        ],
        out_specs=pl.BlockSpec((tb, OUT_FEATURES), lambda i: (i, 0)),
        compiler_params=pltpu.CompilerParams(
            dimension_semantics=("parallel",),
        ),
    )(x, w_eff, b_eff)


# -----------------------------------------------------------------------------
# Optional unfused 4-layer kernel (kept for fidelity / if layers must stay)
# -----------------------------------------------------------------------------
def _mlp4_kernel(x_ref,
                 w1_ref, b1_ref,
                 w2_ref, b2_ref,
                 w3_ref, b3_ref,
                 w4_ref, b4_ref,
                 o_ref):
    bf16 = jnp.bfloat16
    # fc1: [tb, 32] @ [32, 896] + [1, 896]   (K=32: stay f32, accuracy for free)
    h = jnp.dot(x_ref[...], w1_ref[...],
                preferred_element_type=jnp.float32) + b1_ref[...]
    # fc2: [tb, 896] @ [896, 896] + [1, 896]  (bf16 MXU inputs, f32 accumulate)
    h = jnp.dot(h.astype(bf16), w2_ref[...],
                preferred_element_type=jnp.float32) + b2_ref[...]
    # fc3: [tb, 896] @ [896, 896] + [1, 896]
    h = jnp.dot(h.astype(bf16), w3_ref[...],
                preferred_element_type=jnp.float32) + b3_ref[...]
    # out: [tb, 896] @ [896, 128] + [1, 128]  -> lane-dense (unmasked) store
    o_ref[...] = (jnp.dot(h.astype(bf16), w4_ref[...],
                          preferred_element_type=jnp.float32)
                  + b4_ref[...]).astype(o_ref.dtype)


@jax.jit
def mymodel_forward_layers(x, prepared):
    """Unfused 4-layer forward.  Writes a lane-dense (B, 128) padded output and slices
    the real 10 columns in the wrapper (padding columns are exactly zero)."""
    B = x.shape[0]
    tb = _pick_batch_tile(B, MAX_BATCH_TILE_LAYERS)
    nb = pl.cdiv(B, tb)

    const0 = lambda i: (0, 0)
    out_padded = pl.pallas_call(
        _mlp4_kernel,
        out_shape=jax.ShapeDtypeStruct((B, OUT_PAD), x.dtype),
        grid=(nb,),
        in_specs=[
            pl.BlockSpec((tb, IN_FEATURES), lambda i: (i, 0)),
            pl.BlockSpec((IN_FEATURES, HIDDEN_PAD), const0),
            pl.BlockSpec((1, HIDDEN_PAD), const0),
            pl.BlockSpec((HIDDEN_PAD, HIDDEN_PAD), const0),
            pl.BlockSpec((1, HIDDEN_PAD), const0),
            pl.BlockSpec((HIDDEN_PAD, HIDDEN_PAD), const0),
            pl.BlockSpec((1, HIDDEN_PAD), const0),
            pl.BlockSpec((HIDDEN_PAD, OUT_PAD), const0),
            pl.BlockSpec((1, OUT_PAD), const0),
        ],
        out_specs=pl.BlockSpec((tb, OUT_PAD), lambda i: (i, 0)),
        compiler_params=pltpu.CompilerParams(
            dimension_semantics=("parallel",),
            vmem_limit_bytes=24 << 20,   # ~12-14 MiB footprint at tb=512; <= v7x scoped default
        ),
    )(x,
      prepared["w1"], prepared["b1"],
      prepared["w2"], prepared["b2"],
      prepared["w3"], prepared["b3"],
      prepared["w4"], prepared["b4"])
    return out_padded[:, :OUT_FEATURES]


# -----------------------------------------------------------------------------
# Self-test
# -----------------------------------------------------------------------------
if __name__ == "__main__":
    key = jax.random.PRNGKey(0)
    k_x, k_p = jax.random.split(key)

    batch = 8
    x = jax.random.normal(k_x, (batch, IN_FEATURES), dtype=jnp.float32)
    params = init_params(k_p)

    # Plain-JAX reference: chained f32 affine maps (same math as the PyTorch module).
    ref = x
    for wn, bn in (("w1", "b1"), ("w2", "b2"), ("w3", "b3"), ("w4", "b4")):
        ref = ref @ params[wn] + params[bn]

    # Primary folded path (f64 fold -> f32 kernel).
    folded = fold_params(params)
    out = jax.block_until_ready(mymodel_forward(x, folded["w"], folded["b"]))
    assert out.shape == (batch, OUT_FEATURES)
    assert jnp.allclose(out, ref, atol=5e-3, rtol=5e-3), "folded kernel mismatch vs reference"

    # Optional unfused path (bf16 weights for fc2/fc3/out -> looser tolerance).
    prepared = prepare_layer_params(params)
    out_layers = jax.block_until_ready(mymodel_forward_layers(x, prepared))
    assert out_layers.shape == (batch, OUT_FEATURES)
    assert jnp.allclose(out_layers, ref, atol=3e-2, rtol=3e-2), "layered kernel mismatch vs reference"

    print("KERNEL_OK")
</pallas_src>

<mosaic_0001>
module attributes {stable_mosaic.version = 11 : i64} {
  func.func @_affine_kernel(%arg0: i32, %arg1: memref<8x32xf32, #tpu.memory_space<vmem>>, %arg2: memref<32x10xf32, #tpu.memory_space<vmem>>, %arg3: memref<1x10xf32, #tpu.memory_space<vmem>>, %arg4: memref<8x10xf32, #tpu.memory_space<vmem>>) attributes {dimension_semantics = [#tpu.dimension_semantics<parallel>], iteration_bounds = array<i64: 1>, scalar_prefetch = 0 : i64, scratch_operands = 0 : i64, tpu.core_type = #tpu.core_type<tc>, window_params = [{transform_indices = @transform_0, window_bounds = array<i64: 8, 32>}, {pipeline_mode = #tpu.pipeline_mode<synchronous>, transform_indices = @transform_1, window_bounds = array<i64: 32, 10>}, {pipeline_mode = #tpu.pipeline_mode<synchronous>, transform_indices = @transform_2, window_bounds = array<i64: 1, 10>}, {transform_indices = @transform_3, window_bounds = array<i64: 8, 10>}]} {
    %c0 = arith.constant 0 : index
    %c0_0 = arith.constant 0 : index
    %0 = vector.load %arg1[%c0, %c0_0] : memref<8x32xf32, #tpu.memory_space<vmem>>, vector<8x32xf32>
    %c0_1 = arith.constant 0 : index
    %c0_2 = arith.constant 0 : index
    %1 = vector.load %arg2[%c0_1, %c0_2] : memref<32x10xf32, #tpu.memory_space<vmem>>, vector<32x10xf32>
    %cst = arith.constant dense<0.000000e+00> : vector<8x10xf32>
    %2 = tpu.matmul %0, %1, %cst {dimension_numbers = #tpu.dot_dimension_numbers<[1], [0], [0], [1], [0, 0, 1, 1], [], []>} : vector<8x32xf32>, vector<32x10xf32>, vector<8x10xf32> -> vector<8x10xf32>
    %c0_3 = arith.constant 0 : index
    %c0_4 = arith.constant 0 : index
    %3 = vector.load %arg3[%c0_3, %c0_4] : memref<1x10xf32, #tpu.memory_space<vmem>>, vector<1x10xf32>
    %4 = vector.broadcast %3 : vector<1x10xf32> to vector<8x10xf32>
    %5 = arith.addf %2, %4 : vector<8x10xf32>
    %c0_5 = arith.constant 0 : index
    %c0_6 = arith.constant 0 : index
    %6 = vector.load %arg4[%c0_5, %c0_6] : memref<8x10xf32, #tpu.memory_space<vmem>>, vector<8x10xf32>
    tpu.vector_store %arg4[%c0_5, %c0_6], %5 {strides = array<i32>} : memref<8x10xf32, #tpu.memory_space<vmem>>, vector<8x10xf32>,
    return
  }
  func.func @transform_0(%arg0: i32) -> (i32, i32) {
    %c0_i32 = arith.constant 0 : i32
    %c0_i32_0 = arith.constant 0 : i32
    return %arg0, %c0_i32 : i32, i32
  }
  func.func @transform_1(%arg0: i32) -> (i32, i32) {
    %c0_i32 = arith.constant 0 : i32
    %c0_i32_0 = arith.constant 0 : i32
    %c0_i32_1 = arith.constant 0 : i32
    return %c0_i32, %c0_i32_0 : i32, i32
  }
  func.func @transform_2(%arg0: i32) -> (i32, i32) {
    %c0_i32 = arith.constant 0 : i32
    %c0_i32_0 = arith.constant 0 : i32
    %c0_i32_1 = arith.constant 0 : i32
    return %c0_i32, %c0_i32_0 : i32, i32
  }
  func.func @transform_3(%arg0: i32) -> (i32, i32) {
    %c0_i32 = arith.constant 0 : i32
    %c0_i32_0 = arith.constant 0 : i32
    return %arg0, %c0_i32 : i32, i32
  }
}

</mosaic_0001>

<bundles_post_ra>
// kernel: mymodel_forward.1
= control target key start
LH: loop header
LB: loop body
LE: loop exit
PB: predicated region body
PF: predicated region fallthrough
CT: control target
= control target key end

     0   :  { %v169_v3 = vmov 0.0|0.0   ;;  %vm170_vm0 = vmmov 0   ;;  %v171_v6 = vmov 0.0   ;;  %s223_s0 = inlined_call_operand.vmem [shape: f32[8,32], index: 0, kind: input, shape index: {}]   ;;  %s224_s1 = inlined_call_operand.vmem [shape: f32[32,10], index: 1, kind: input, shape index: {}]   ;;  %s225_s2 = inlined_call_operand.vmem [shape: f32[1,10], index: 2, kind: input, shape index: {}]   ;;  %s226_s3 = inlined_call_operand.hbm [shape: f32[8,10], index: 3, kind: output, shape index: {}]  }
   0x1   :  { %v16_v0 = vld [vmem:[%s224_s1] sm:$0xff]  ;;  %v17_v1 = vld [vmem:[%s224_s1 + $0x8] sm:$0xff]  ;;  %v18_v2 = vld [vmem:[%s224_s1 + $0x10] sm:$0xff]  ;;  %135 = vmatprep.subr.bf16.mxu0 %v169_v3  ;;  %132 = vmatprep.mubr.msk.f32.mxu0 %vm170_vm0, %v171_v6 }
   0x2   :  { %v136_v4 = vpack.c.bf16 %v17_v1, %v16_v0  ;;  %v19_v5 = vld [vmem:[%s224_s1 + $0x18] sm:$0xff] }
   0x3   :  { %8 = vsyncpa [#allocation3], 0  ;;  %v139_v7 = vpack.c.bf16 %v19_v5, %v18_v2  ;;  %v15_v8 = vld [vmem:[%s223_s0] sm:$0xff]  ;;  %vm27_vm1 = vcmask 261120   ;;  %s172_s24 = smov [#allocation2]   ;;  %vm101_vm2 = vcmask 80896  }
   0x4   :  { %137 = vmatpush3.bf16.msra.mxu0 %v136_v4  ;;  %v117_v9 = vld [vmem:[%s225_s2] ss:$0 sm:$0xff]  ;;  %s109_s1 = sshll.u32 %s172_s24, 4  ;;  %s110_s1 = int_to_ptr.vmem [resolvable:$true] %s109_s1 }
   0x5   :  { %138 = vmatprep.subr.bf16.mxu0 %v169_v3  ;;  %s145_s25 = scalar_lea.vmem %s110_s1, 128  ;;  %p150_p1 = scmp.lt.s32.totalorder %s110_s1, %s110_s1 }
   0x6   :  { %p146_p0 = scmp.ne.s32.totalorder %s110_s1, %s145_s25  ;;  %p151_p2 = scmp.lt.s32.totalorder %s145_s25, %s145_s25 }
   0x8   :  { %140 = vmatpush3.bf16.msra.mxu0 %v139_v7  ;;  %p152_p3 = por %p151_p2, %p150_p1 }
   0xa   :  { %p153_p4 = pnand %p152_p3, %p146_p0 }
   0xb   :  { %133 = vmatmul.mubr.msk.f32.vlgmr.msra.gmra.mrb[0].mxu0 %vm27_vm1, %v15_v8 }
  0xde   :  { %v97_v10 = vpop.f32.mrb[0].mxu0 }
  0xdf   :  { %v98_v11 = vadd.f32 %v117_v9, %v97_v10  ;;  %v134_v12 = vpop.f32.mrb[1].mxu0 }
  0xe1   :  { %102 = vst.msk [vmem:[#allocation2] sm:$0xff] %vm101_vm2, %v98_v11 }
  0xe2   :  { %156 = shalt.err (!%p153_p4)
}
  0xe3   :  { %s157_s27 = scalar_lea.hbm %s226_s3, 128 }
  0xe4   :  { %p158_p5 = scmp.ne.s32.totalorder %s226_s3, %s157_s27  ;;  %p161_p6 = scmp.lt.u32.totalorder %s157_s27, %s226_s3 }
  0xe6   :  { %p163_p7 = pnand %p161_p6, %p158_p5 }
  0xe8   :  { %166 = shalt.err (!%p163_p7)
}
  0xe9   :  { %112 = dma.vmem_to_hbm [thread:$0]  %s110_s1, 128, %s226_s3, [#allocation3]  }
  0xea   :  { %167 = dma.done.wait [#allocation3], 128  }
  0xeb   :  { %168 = vsyncadd [#allocation3], 4294967168 }
  0xec   :  { %116 = vsyncpa [#allocation3], 1 }

</bundles_post_ra>
